<compile_context>
chip_gen: v7x
topology: tpu7x:2x2x1
jax: 0.10.0
libtpu: 0.0.40
codegen_flags: <defaults>
</compile_context>

<pallas_src>
import functools

import jax
import jax.numpy as jnp
from jax.experimental import pallas as pl
from jax.experimental.pallas import tpu as pltpu


def _round_up(n, m):
    return ((n + m - 1) // m) * m


def mlp_kernel(xT_ref, w1_ref, w2_ref, b2_ref, w3_ref, b3_ref, o_ref, *, h_dtype):
    """One batch tile in transposed layout (batch on the lane axis).

    xT_ref: (K_pad, TB)  features + ones-row + zero padding (K_pad = 8)
    w1_ref: (128, K_pad) fc1 weight with b1 folded into the ones column
    w2_ref: (64, 128)    fc2 weight (bf16 or f32)
    b2_ref: (64, 1)      w3_ref: (64, 1)   b3_ref: (1, 1)
    o_ref : (1, TB)      lane-dense sigmoid outputs for this tile.
    """
    # fc1 (+ bias, folded in): one MXU matmul, f32 accumulate.
    h1 = jnp.dot(w1_ref[...], xT_ref[...],
                 preferred_element_type=jnp.float32)          # (128, TB)
    # ReLU in h_dtype (bf16 halves VALU/vst work on v6e/v7x; use f32 on v5e),
    # then present the fc2 MXU operand in w2's dtype.
    h1 = jnp.maximum(h1.astype(h_dtype), 0.0).astype(w2_ref.dtype)

    # fc2 (128 -> 64): MXU matmul, f32 accumulate, bias + ReLU on the VPU.
    h2 = jnp.dot(w2_ref[...], h1, preferred_element_type=jnp.float32)  # (64, TB)
    h2 = jnp.maximum(h2 + b2_ref[...], 0.0)

    # fc3 (N=1): VPU mul + XLU sublane reduction (cheaper than a 1-lane MXU pass).
    z = jnp.sum(h2 * w3_ref[...], axis=0, keepdims=True) + b3_ref[...]  # (1, TB)

    # sigmoid = 1 / (1 + exp(-z)); exp and approx reciprocal both run on the EUP.
    sig = pl.reciprocal(1.0 + jnp.exp(-z), approx=True)
    o_ref[...] = sig.astype(o_ref.dtype)


def mlp_forward(x, params, *, block_b=8192, fc2_bf16=True, relu_bf16=None):
    """x: (B, 2) float32. params: PyTorch-convention weights/biases."""
    B = x.shape[0]
    K_PAD = 8  # 2 features + 1 ones-row (bias fold), padded to the f32 sublane tile.

    # Adaptive tiling: never append a nearly-empty trailing tile, and give v7x's
    # two TensorCores at least one tile each for mid-size batches.
    G = max(1, pl.cdiv(B, block_b))
    if B > 256 and G < 2:
        G = 2
    TB = _round_up(pl.cdiv(B, G), 128)
    B_pad = G * TB

    fc2_dtype = jnp.bfloat16 if fc2_bf16 else jnp.float32
    if relu_bf16 is None:
        relu_bf16 = fc2_bf16          # v6e/v7x default; pass relu_bf16=False on v5e.
    h_dtype = jnp.bfloat16 if (relu_bf16 and fc2_bf16) else jnp.float32

    # Wrapper-side layout plumbing: batch on the lane axis, bias folded via a
    # ones-row, contraction dim padded to 8 so fc1 is a plain MXU dot.
    # TODO(synk): if the producer can emit x feature-major/padded, this pad+T
    # (one extra HBM pass) disappears entirely.
    xf = x.astype(jnp.float32)
    x_aug = jnp.concatenate([xf, jnp.ones((B, 1), jnp.float32)], axis=1)   # (B, 3)
    x_aug = jnp.pad(x_aug, ((0, B_pad - B), (0, K_PAD - 3)))               # (B_pad, 8)
    xT = x_aug.T                                                           # (8, B_pad)

    w1 = params["w1"].astype(jnp.float32)                       # (128, 2)
    b1 = params["b1"].reshape(128, 1).astype(jnp.float32)
    w1_aug = jnp.concatenate(
        [w1, b1, jnp.zeros((128, K_PAD - 3), jnp.float32)], axis=1)        # (128, 8)

    w2 = params["w2"].astype(fc2_dtype)                         # (64, 128)
    b2 = params["b2"].reshape(64, 1).astype(jnp.float32)
    w3 = params["w3"].reshape(64, 1).astype(jnp.float32)        # fc3.weight is (1, 64)
    b3 = params["b3"].reshape(1, 1).astype(jnp.float32)

    # Constant index_maps keep the (tiny) weights VMEM-resident across the grid.
    def full(a):
        return pl.BlockSpec(a.shape, lambda i, _nd=a.ndim: (0,) * _nd)

    out = pl.pallas_call(
        functools.partial(mlp_kernel, h_dtype=h_dtype),
        out_shape=jax.ShapeDtypeStruct((1, B_pad), jnp.float32),
        grid=(G,),
        in_specs=[
            pl.BlockSpec((K_PAD, TB), lambda i: (0, i)),   # batch-tiled input
            full(w1_aug), full(w2), full(b2), full(w3), full(b3),
        ],
        out_specs=pl.BlockSpec((1, TB), lambda i: (0, i)),  # lane-dense output tile
        compiler_params=pltpu.CompilerParams(
            dimension_semantics=("parallel",)),             # shards tiles over v7x's 2 TCs
    )(xT, w1_aug, w2, b2, w3, b3)

    return out[0, :B].reshape(B, 1)


def init_params(key):
    """Deterministic init matching nn.Linear default (uniform +/- 1/sqrt(fan_in))."""
    def linear_init(k, fan_in, fan_out):
        k_w, k_b = jax.random.split(k)
        bound = 1.0 / jnp.sqrt(fan_in)
        w = jax.random.uniform(k_w, (fan_out, fan_in), jnp.float32, -bound, bound)
        b = jax.random.uniform(k_b, (fan_out,), jnp.float32, -bound, bound)
        return w, b

    k1, k2, k3 = jax.random.split(key, 3)
    w1, b1 = linear_init(k1, 2, 128)
    w2, b2 = linear_init(k2, 128, 64)
    w3, b3 = linear_init(k3, 64, 1)
    return {"w1": w1, "b1": b1, "w2": w2, "b2": b2, "w3": w3, "b3": b3}


def mlp_reference(x, p):
    h1 = jnp.maximum(x @ p["w1"].T + p["b1"], 0.0)
    h2 = jnp.maximum(h1 @ p["w2"].T + p["b2"], 0.0)
    return jax.nn.sigmoid(h2 @ p["w3"].T + p["b3"])


if __name__ == "__main__":
    key = jax.random.PRNGKey(0)
    k_params, k_x, k_x2 = jax.random.split(key, 3)
    params = init_params(k_params)

    # Small single-tile case.
    B = 8
    x = jax.random.normal(k_x, (B, 2), jnp.float32)
    ref = mlp_reference(x, params)

    # f32-everywhere path (tight check; only the approx reciprocal differs).
    out_f32 = jax.block_until_ready(mlp_forward(x, params, fc2_bf16=False))
    assert out_f32.shape == (B, 1), out_f32.shape
    assert jnp.allclose(out_f32, ref, atol=5e-3, rtol=0.0), (out_f32, ref)

    # Default path: bf16 h1/w2 through the MXU (f32 accumulate), relaxed tolerance.
    out = jax.block_until_ready(mlp_forward(x, params))
    assert out.shape == (B, 1), out.shape
    assert jnp.allclose(out, ref, atol=2e-2, rtol=0.0), (out, ref)

    # Multi-tile case exercising the adaptive grid (G=3, TB=128, partial last tile).
    B2 = 300
    x2 = jax.random.normal(k_x2, (B2, 2), jnp.float32)
    ref2 = mlp_reference(x2, params)
    out2 = jax.block_until_ready(mlp_forward(x2, params, block_b=128))
    assert out2.shape == (B2, 1), out2.shape
    assert jnp.allclose(out2, ref2, atol=2e-2, rtol=0.0), (out2, ref2)

    print("KERNEL_OK")
</pallas_src>

<mosaic_0001>
module attributes {stable_mosaic.version = 11 : i64} {
  func.func @mlp_kernel(%arg0: i32, %arg1: memref<8x128xf32, #tpu.memory_space<vmem>>, %arg2: memref<128x8xf32, #tpu.memory_space<vmem>>, %arg3: memref<64x128xf32, #tpu.memory_space<vmem>>, %arg4: memref<64x1xf32, #tpu.memory_space<vmem>>, %arg5: memref<64x1xf32, #tpu.memory_space<vmem>>, %arg6: memref<1x1xf32, #tpu.memory_space<vmem>>, %arg7: memref<1x128xf32, #tpu.memory_space<vmem>>) attributes {dimension_semantics = [#tpu.dimension_semantics<parallel>], iteration_bounds = array<i64: 1>, scalar_prefetch = 0 : i64, scratch_operands = 0 : i64, tpu.core_type = #tpu.core_type<tc>, window_params = [{transform_indices = @transform_0, window_bounds = array<i64: 8, 128>}, {pipeline_mode = #tpu.pipeline_mode<synchronous>, transform_indices = @transform_1, window_bounds = array<i64: 128, 8>}, {pipeline_mode = #tpu.pipeline_mode<synchronous>, transform_indices = @transform_2, window_bounds = array<i64: 64, 128>}, {pipeline_mode = #tpu.pipeline_mode<synchronous>, transform_indices = @transform_3, window_bounds = array<i64: 64, 1>}, {pipeline_mode = #tpu.pipeline_mode<synchronous>, transform_indices = @transform_4, window_bounds = array<i64: 64, 1>}, {pipeline_mode = #tpu.pipeline_mode<synchronous>, transform_indices = @transform_5, window_bounds = array<i64: 1, 1>}, {transform_indices = @transform_6, window_bounds = array<i64: 1, 128>}]} {
    %c0 = arith.constant 0 : index
    %c0_0 = arith.constant 0 : index
    %0 = vector.load %arg2[%c0, %c0_0] : memref<128x8xf32, #tpu.memory_space<vmem>>, vector<128x8xf32>
    %c0_1 = arith.constant 0 : index
    %c0_2 = arith.constant 0 : index
    %1 = vector.load %arg1[%c0_1, %c0_2] : memref<8x128xf32, #tpu.memory_space<vmem>>, vector<8x128xf32>
    %cst = arith.constant dense<0.000000e+00> : vector<128x128xf32>
    %2 = tpu.matmul %0, %1, %cst {dimension_numbers = #tpu.dot_dimension_numbers<[1], [0], [0], [1], [0, 0, 1, 1], [], []>} : vector<128x8xf32>, vector<8x128xf32>, vector<128x128xf32> -> vector<128x128xf32>
    %cst_3 = arith.constant 0.000000e+00 : f32
    %3 = vector.broadcast %cst_3 : f32 to vector<128x128xf32>
    %4 = arith.maximumf %2, %3 : vector<128x128xf32>
    %c0_4 = arith.constant 0 : index
    %c0_5 = arith.constant 0 : index
    %5 = vector.load %arg3[%c0_4, %c0_5] : memref<64x128xf32, #tpu.memory_space<vmem>>, vector<64x128xf32>
    %cst_6 = arith.constant dense<0.000000e+00> : vector<64x128xf32>
    %6 = tpu.matmul %5, %4, %cst_6 {dimension_numbers = #tpu.dot_dimension_numbers<[1], [0], [0], [1], [0, 0, 1, 1], [], []>} : vector<64x128xf32>, vector<128x128xf32>, vector<64x128xf32> -> vector<64x128xf32>
    %c0_7 = arith.constant 0 : index
    %c0_8 = arith.constant 0 : index
    %7 = vector.load %arg4[%c0_7, %c0_8] : memref<64x1xf32, #tpu.memory_space<vmem>>, vector<64x1xf32>
    %8 = vector.broadcast %7 : vector<64x1xf32> to vector<64x128xf32>
    %9 = arith.addf %6, %8 : vector<64x128xf32>
    %cst_9 = arith.constant 0.000000e+00 : f32
    %10 = vector.broadcast %cst_9 : f32 to vector<64x128xf32>
    %11 = arith.maximumf %9, %10 : vector<64x128xf32>
    %c0_10 = arith.constant 0 : index
    %c0_11 = arith.constant 0 : index
    %12 = vector.load %arg5[%c0_10, %c0_11] : memref<64x1xf32, #tpu.memory_space<vmem>>, vector<64x1xf32>
    %13 = vector.broadcast %12 : vector<64x1xf32> to vector<64x128xf32>
    %14 = arith.mulf %11, %13 : vector<64x128xf32>
    %cst_12 = arith.constant dense<0.000000e+00> : vector<128xf32>
    %15 = vector.multi_reduction <add>, %14, %cst_12 [0] : vector<64x128xf32> to vector<128xf32>
    %16 = vector.shape_cast %15 : vector<128xf32> to vector<1x128xf32>
    %c0_13 = arith.constant 0 : index
    %c0_14 = arith.constant 0 : index
    %17 = vector.load %arg6[%c0_13, %c0_14] : memref<1x1xf32, #tpu.memory_space<vmem>>, vector<1x1xf32>
    %18 = vector.broadcast %17 : vector<1x1xf32> to vector<1x128xf32>
    %19 = arith.addf %16, %18 : vector<1x128xf32>
    %cst_15 = arith.constant 0.000000e+00 : f32
    %20 = vector.broadcast %cst_15 : f32 to vector<1x128xf32>
    %21 = arith.subf %20, %19 : vector<1x128xf32>
    %22 = math.exp %21 : vector<1x128xf32>
    %cst_16 = arith.constant 1.000000e+00 : f32
    %23 = vector.broadcast %cst_16 : f32 to vector<1x128xf32>
    %24 = arith.addf %23, %22 : vector<1x128xf32>
    %25 = tpu.reciprocal %24 {approx = true} : vector<1x128xf32> -> vector<1x128xf32>
    %c0_17 = arith.constant 0 : index
    %c0_18 = arith.constant 0 : index
    %26 = vector.load %arg7[%c0_17, %c0_18] : memref<1x128xf32, #tpu.memory_space<vmem>>, vector<1x128xf32>
    tpu.vector_store %arg7[%c0_17, %c0_18], %25 {strides = array<i32>} : memref<1x128xf32, #tpu.memory_space<vmem>>, vector<1x128xf32>,
    return
  }
  func.func @transform_0(%arg0: i32) -> (i32, i32) {
    %c0_i32 = arith.constant 0 : i32
    %c0_i32_0 = arith.constant 0 : i32
    return %c0_i32, %arg0 : i32, i32
  }
  func.func @transform_1(%arg0: i32) -> (i32, i32) {
    %c0_i32 = arith.constant 0 : i32
    %c0_i32_0 = arith.constant 0 : i32
    %c0_i32_1 = arith.constant 0 : i32
    return %c0_i32, %c0_i32_0 : i32, i32
  }
  func.func @transform_2(%arg0: i32) -> (i32, i32) {
    %c0_i32 = arith.constant 0 : i32
    %c0_i32_0 = arith.constant 0 : i32
    %c0_i32_1 = arith.constant 0 : i32
    return %c0_i32, %c0_i32_0 : i32, i32
  }
  func.func @transform_3(%arg0: i32) -> (i32, i32) {
    %c0_i32 = arith.constant 0 : i32
    %c0_i32_0 = arith.constant 0 : i32
    %c0_i32_1 = arith.constant 0 : i32
    return %c0_i32, %c0_i32_0 : i32, i32
  }
  func.func @transform_4(%arg0: i32) -> (i32, i32) {
    %c0_i32 = arith.constant 0 : i32
    %c0_i32_0 = arith.constant 0 : i32
    %c0_i32_1 = arith.constant 0 : i32
    return %c0_i32, %c0_i32_0 : i32, i32
  }
  func.func @transform_5(%arg0: i32) -> (i32, i32) {
    %c0_i32 = arith.constant 0 : i32
    %c0_i32_0 = arith.constant 0 : i32
    %c0_i32_1 = arith.constant 0 : i32
    return %c0_i32, %c0_i32_0 : i32, i32
  }
  func.func @transform_6(%arg0: i32) -> (i32, i32) {
    %c0_i32 = arith.constant 0 : i32
    %c0_i32_0 = arith.constant 0 : i32
    return %c0_i32, %arg0 : i32, i32
  }
}

</mosaic_0001>

<bundles_post_ra>
// kernel: tpu_custom_call.1
= control target key start
LH: loop header
LB: loop body
LE: loop exit
PB: predicated region body
PF: predicated region fallthrough
CT: control target
= control target key end

     0   :  { %s920_s0 = inlined_call_operand.vmem [shape: f32[8,128], index: 0, kind: input, shape index: {}]   ;;  %s921_s1 = inlined_call_operand.vmem [shape: f32[128,8], index: 1, kind: input, shape index: {}]   ;;  %s922_s2 = inlined_call_operand.vmem [shape: f32[64,128], index: 2, kind: input, shape index: {}]   ;;  %s923_s3 = inlined_call_operand.vmem [shape: f32[64,1], index: 3, kind: input, shape index: {}]   ;;  %s924_s4 = inlined_call_operand.vmem [shape: f32[64,1], index: 4, kind: input, shape index: {}]   ;;  %s925_s5 = inlined_call_operand.<no memory space> [shape: f32[1,1], index: 5, kind: input, shape index: {}]   ;;  %s926_s6 = inlined_call_operand.hbm [shape: f32[1,128], index: 6, kind: output, shape index: {}]  }
   0x1   :  { %v11_v0 = vstv %s925_s5 }
   0x2   :  { %12 = vst [vmem:[#allocation2] sm:$0x1] %v11_v0 }
   0x3   :  { %v42_v1 = vld [vmem:[%s920_s0] sm:$0xff]  ;;  %vm43_vm0 = vcmask 64512   ;;  %v27_v3 = vld [vmem:[%s921_s1 + $0x8] sm:$0xff]  ;;  %v28_v4 = vld [vmem:[%s921_s1 + $0x10] sm:$0xff] }
   0x4   :  { %v26_v2 = vld [vmem:[%s921_s1] sm:$0xff]  ;;  %579 = vmatprep.subr.mxu0 %v42_v1  ;;  %v29_v5 = vld [vmem:[%s921_s1 + $0x18] sm:$0xff] }
   0x5   :  { %581 = vmatprep.mubr.msk.f32.mxu0 %vm43_vm0, %v26_v2  ;;  %580 = vmatpush3.msra.mxu0 %v42_v1  ;;  %v30_v6 = vld [vmem:[%s921_s1 + $0x20] sm:$0xff] }
   0x6   :  { %582 = vmatmul.mubr.msk.f32.vlgmr.msra.gmra.mrb[0].mxu0 %vm43_vm0, %v27_v3 }
   0x7   :  { %584 = vmatprep.mubr.msk.f32.mxu0 %vm43_vm0, %v28_v4 }
   0x8   :  { %13 = vsyncpa [#allocation4], 0  ;;  %v31_v7 = vld [vmem:[%s921_s1 + $0x28] sm:$0xff]  ;;  %v32_v8 = vld [vmem:[%s921_s1 + $0x30] sm:$0xff]  ;;  %v729_v22 = vmov 0  }
   0x9   :  { %v33_v9 = vld [vmem:[%s921_s1 + $0x38] sm:$0xff]  ;;  %v34_v10 = vld [vmem:[%s921_s1 + $0x40] sm:$0xff]  ;;  %v35_v11 = vld [vmem:[%s921_s1 + $0x48] sm:$0xff]  ;;  %699 = vset.pattern.permute.xlu0 %v729_v22  ;;  %700 = vset.pattern.permute.xlu1 %v729_v22 }
   0xa   :  { %585 = vmatmul.mubr.msk.f32.gmra.mrb[2].mxu0 %vm43_vm0, %v29_v5  ;;  %v36_v12 = vld [vmem:[%s921_s1 + $0x50] sm:$0xff]  ;;  %v37_v13 = vld [vmem:[%s921_s1 + $0x58] sm:$0xff]  ;;  %v38_v14 = vld [vmem:[%s921_s1 + $0x60] sm:$0xff] }
   0xb   :  { %587 = vmatprep.mubr.msk.f32.mxu0 %vm43_vm0, %v30_v6  ;;  %v39_v15 = vld [vmem:[%s921_s1 + $0x68] sm:$0xff]  ;;  %v40_v16 = vld [vmem:[%s921_s1 + $0x70] sm:$0xff]  ;;  %v41_v17 = vld [vmem:[%s921_s1 + $0x78] sm:$0xff] }
   0xc   :  { %v253_v18 = vld [vmem:[%s922_s2] sm:$0xff]  ;;  %v255_v19 = vld [vmem:[%s922_s2 + $0x10] sm:$0xff]  ;;  %v262_v23 = vld [vmem:[%s923_s3 + $0x8] sm:$0xff] }
   0xd   :  { %640 = vmatprep.mubr.f32.mxu1 %v255_v19  ;;  %v261_v20 = vld [vmem:[%s923_s3] sm:$0xff]  ;;  %v263_v21 = vld [vmem:[%s923_s3 + $0x10] sm:$0xff]  ;;  %v264_v24 = vld [vmem:[%s923_s3 + $0x18] sm:$0xff] }
   0xe   :  { %588 = vmatmul.mubr.msk.f32.gmra.mrb[4].mxu0 %vm43_vm0, %v31_v7  ;;  %271 = vperm.xlu0 %699, %v261_v20   ;;  %v422_v25 = vld [vmem:[%s924_s4] sm:$0xff]  ;;  %v423_v26 = vld [vmem:[%s924_s4 + $0x8] sm:$0xff]  ;;  %v424_v28 = vld [vmem:[%s924_s4 + $0x10] sm:$0xff] }
   0xf   :  { %590 = vmatprep.mubr.msk.f32.mxu0 %vm43_vm0, %v32_v8  ;;  %281 = vperm.xlu1 %700, %v263_v21   ;;  %v265_v27 = vld [vmem:[%s923_s3 + $0x20] sm:$0xff]  ;;  %v266_v29 = vld [vmem:[%s923_s3 + $0x28] sm:$0xff]  ;;  %v425_v30 = vld [vmem:[%s924_s4 + $0x18] sm:$0xff] }
  0x10   :  { %v267_v31 = vld [vmem:[%s923_s3 + $0x30] sm:$0xff]  ;;  %v426_v32 = vld [vmem:[%s924_s4 + $0x20] sm:$0xff]  ;;  %v268_v33 = vld [vmem:[%s923_s3 + $0x38] sm:$0xff] }
  0x11   :  { %v427_v34 = vld [vmem:[%s924_s4 + $0x28] sm:$0xff]  ;;  %v428_v35 = vld [vmem:[%s924_s4 + $0x30] sm:$0xff]  ;;  %v429_v36 = vld [vmem:[%s924_s4 + $0x38] sm:$0xff] }
  0x12   :  { %591 = vmatmul.mubr.msk.f32.gmra.mrb[6].mxu0 %vm43_vm0, %v33_v9  ;;  %276 = vperm.xlu0 %699, %v262_v23   ;;  %v491_v37 = vld [vmem:[#allocation2] sm:$0x1]  ;;  %v260_v19 = vld [vmem:[%s922_s2 + $0x38] sm:$0xff] }
  0x13   :  { %593 = vmatprep.mubr.msk.f32.mxu0 %vm43_vm0, %v34_v10  ;;  %286 = vperm.xlu1 %700, %v264_v24  }
  0x16   :  { %594 = vmatmul.mubr.msk.f32.gmra.mrb[8].mxu0 %vm43_vm0, %v35_v11  ;;  %432 = vperm.xlu0 %699, %v422_v25  }
  0x17   :  { %596 = vmatprep.mubr.msk.f32.mxu0 %vm43_vm0, %v36_v12  ;;  %437 = vperm.xlu1 %700, %v423_v26  }
  0x1a   :  { %597 = vmatmul.mubr.msk.f32.gmra.mrb[10].mxu0 %vm43_vm0, %v37_v13  ;;  %291 = vperm.xlu0 %699, %v265_v27  }
  0x1b   :  { %599 = vmatprep.mubr.msk.f32.mxu0 %vm43_vm0, %v38_v14  ;;  %442 = vperm.xlu1 %700, %v424_v28   ;;  %v254_v14 = vld [vmem:[%s922_s2 + $0x8] sm:$0xff] }
  0x1e   :  { %600 = vmatmul.mubr.msk.f32.gmra.mrb[12].mxu0 %vm43_vm0, %v39_v15  ;;  %296 = vperm.xlu0 %699, %v266_v29   ;;  %v256_v15 = vld [vmem:[%s922_s2 + $0x18] sm:$0xff] }
  0x1f   :  { %602 = vmatprep.mubr.msk.f32.mxu0 %vm43_vm0, %v40_v16  ;;  %447 = vperm.xlu1 %700, %v425_v30   ;;  %v257_v16 = vld [vmem:[%s922_s2 + $0x20] sm:$0xff] }
  0x22   :  { %603 = vmatmul.mubr.msk.f32.gmra.mrb[14].mxu0 %vm43_vm0, %v41_v17  ;;  %301 = vperm.xlu0 %699, %v267_v31   ;;  %v258_v17 = vld [vmem:[%s922_s2 + $0x28] sm:$0xff] }
  0x23   :  { %637 = vmatprep.mubr.f32.mxu0 %v253_v18  ;;  %452 = vperm.xlu1 %700, %v426_v32   ;;  %v259_v18 = vld [vmem:[%s922_s2 + $0x30] sm:$0xff]  ;;  %s730_s2 = smov [#allocation3]  }
  0x24   :  { %s514_s23 = sshll.u32 %s730_s2, 4  ;;  %s515_s23 = int_to_ptr.vmem [resolvable:$true] %s514_s23 }
  0x25   :  { %s705_s24 = scalar_lea.vmem %s515_s23, 16  ;;  %s709_s25 = scalar_lea.vmem %s515_s23, 32 }
  0x26   :  { %306 = vperm.xlu0 %699, %v268_v33   ;;  %p706_p0 = scmp.ne.s32.totalorder %s515_s23, %s705_s24  ;;  %p710_p1 = scmp.lt.s32.totalorder %s515_s23, %s515_s23 }
  0x27   :  { %457 = vperm.xlu1 %700, %v427_v34   ;;  %p711_p2 = scmp.lt.s32.totalorder %s709_s25, %s705_s24 }
  0x29   :  { %p712_p3 = por %p711_p2, %p710_p1 }
  0x2a   :  { %462 = vperm.xlu0 %699, %v428_v35  }
  0x2b   :  { %467 = vperm.xlu1 %700, %v429_v36   ;;  %p713_p4 = pnand %p712_p3, %p706_p0 }
  0x2e   :  { %494 = vperm.xlu0 %699, %v491_v37  }
  0x8d   :  { %v272_v20 = vpop.permute.xlu0 %271 }
  0x8e   :  { %v282_v21 = vpop.permute.xlu1 %281 }
  0x91   :  { %v277_v22 = vpop.permute.xlu0 %276 }
  0x92   :  { %v287_v23 = vpop.permute.xlu1 %286 }
  0x95   :  { %v433_v24 = vpop.permute.xlu0 %432 }
  0x96   :  { %v438_v25 = vpop.permute.xlu1 %437 }
  0x99   :  { %v292_v26 = vpop.permute.xlu0 %291 }
  0x9a   :  { %v443_v27 = vpop.permute.xlu1 %442 }
  0x9d   :  { %v297_v28 = vpop.permute.xlu0 %296 }
  0x9e   :  { %v448_v29 = vpop.permute.xlu1 %447 }
  0xd9   :  { %v583_v38 = vpop.f32.mrb[0].mxu0 }
  0xda   :  { %v238_v39 = vmax.f32 %v583_v38, 0.0  ;;  %v158_v40 = vpop.f32.mrb[1].mxu0  ;;  %v302_v38 = vpop.permute.xlu0 %301 }
  0xdb   :  { %v237_v41 = vmax.f32 %v158_v40, 0.0 }
  0xdd   :  { %v649_v42 = vpack.c.bf16 %v238_v39, %v237_v41  ;;  %v586_v43 = vpop.f32.mrb[2].mxu0 }
  0xde   :  { %v240_v44 = vmax.f32 %v586_v43, 0.0  ;;  %v168_v45 = vpop.f32.mrb[3].mxu0  ;;  %v453_v43 = vpop.permute.xlu1 %452 }
  0xdf   :  { %v239_v46 = vmax.f32 %v168_v45, 0.0  ;;  %650 = vmatprep.subr.bf16.mxu0 %v649_v42  ;;  %681 = vmatprep.subr.bf16.mxu1 %v649_v42 }
  0xe0   :  { %652 = vmatpush3.bf16.msra.mxu0 %v649_v42  ;;  %689 = vmatpush3.bf16.msra.mxu1 %v649_v42 }
  0xe1   :  { %v653_v47 = vpack.c.bf16 %v240_v44, %v239_v46  ;;  %v589_v48 = vpop.f32.mrb[4].mxu0 }
  0xe2   :  { %v242_v49 = vmax.f32 %v589_v48, 0.0  ;;  %v178_v50 = vpop.f32.mrb[5].mxu0 }
  0xe3   :  { %v241_v51 = vmax.f32 %v178_v50, 0.0  ;;  %654 = vmatprep.subr.bf16.mxu0 %v653_v47  ;;  %682 = vmatprep.subr.bf16.mxu1 %v653_v47 }
  0xe4   :  { %656 = vmatpush3.bf16.msra.mxu0 %v653_v47  ;;  %690 = vmatpush3.bf16.msra.mxu1 %v653_v47 }
  0xe5   :  { %v657_v52 = vpack.c.bf16 %v242_v49, %v241_v51  ;;  %v592_v53 = vpop.f32.mrb[6].mxu0 }
  0xe6   :  { %v244_v54 = vmax.f32 %v592_v53, 0.0  ;;  %v188_v55 = vpop.f32.mrb[7].mxu0 }
  0xe7   :  { %v243_v56 = vmax.f32 %v188_v55, 0.0  ;;  %658 = vmatprep.subr.bf16.mxu0 %v657_v52  ;;  %683 = vmatprep.subr.bf16.mxu1 %v657_v52 }
  0xe8   :  { %660 = vmatpush3.bf16.msra.mxu0 %v657_v52  ;;  %691 = vmatpush3.bf16.msra.mxu1 %v657_v52 }
  0xe9   :  { %v661_v57 = vpack.c.bf16 %v244_v54, %v243_v56  ;;  %v595_v58 = vpop.f32.mrb[8].mxu0  ;;  %v307_v54 = vpop.permute.xlu0 %306 }
  0xea   :  { %v246_v59 = vmax.f32 %v595_v58, 0.0  ;;  %v198_v60 = vpop.f32.mrb[9].mxu0 }
  0xeb   :  { %v245_v61 = vmax.f32 %v198_v60, 0.0  ;;  %662 = vmatprep.subr.bf16.mxu0 %v661_v57  ;;  %684 = vmatprep.subr.bf16.mxu1 %v661_v57 }
  0xec   :  { %664 = vmatpush3.bf16.msra.mxu0 %v661_v57  ;;  %692 = vmatpush3.bf16.msra.mxu1 %v661_v57 }
  0xed   :  { %v665_v62 = vpack.c.bf16 %v246_v59, %v245_v61  ;;  %v598_v63 = vpop.f32.mrb[10].mxu0  ;;  %v458_v61 = vpop.permute.xlu1 %457 }
  0xee   :  { %v248_v0 = vmax.f32 %v598_v63, 0.0  ;;  %v208_v1 = vpop.f32.mrb[11].mxu0 }
  0xef   :  { %v247_v2 = vmax.f32 %v208_v1, 0.0  ;;  %666 = vmatprep.subr.bf16.mxu0 %v665_v62  ;;  %685 = vmatprep.subr.bf16.mxu1 %v665_v62 }
  0xf0   :  { %668 = vmatpush3.bf16.msra.mxu0 %v665_v62  ;;  %693 = vmatpush3.bf16.msra.mxu1 %v665_v62 }
  0xf1   :  { %v669_v3 = vpack.c.bf16 %v248_v0, %v247_v2  ;;  %v601_v4 = vpop.f32.mrb[12].mxu0 }
  0xf2   :  { %v250_v5 = vmax.f32 %v601_v4, 0.0  ;;  %v218_v6 = vpop.f32.mrb[13].mxu0  ;;  %v463_v4 = vpop.permute.xlu0 %462 }
  0xf3   :  { %v249_v7 = vmax.f32 %v218_v6, 0.0  ;;  %670 = vmatprep.subr.bf16.mxu0 %v669_v3  ;;  %686 = vmatprep.subr.bf16.mxu1 %v669_v3 }
  0xf4   :  { %672 = vmatpush3.bf16.msra.mxu0 %v669_v3  ;;  %694 = vmatpush3.bf16.msra.mxu1 %v669_v3 }
  0xf5   :  { %v673_v8 = vpack.c.bf16 %v250_v5, %v249_v7  ;;  %v604_v9 = vpop.f32.mrb[14].mxu0  ;;  %v468_v7 = vpop.permute.xlu1 %467 }
  0xf6   :  { %v252_v10 = vmax.f32 %v604_v9, 0.0  ;;  %v228_v11 = vpop.f32.mrb[15].mxu0 }
  0xf7   :  { %v251_v12 = vmax.f32 %v228_v11, 0.0  ;;  %674 = vmatprep.subr.bf16.mxu0 %v673_v8  ;;  %687 = vmatprep.subr.bf16.mxu1 %v673_v8 }
  0xf8   :  { %676 = vmatpush3.bf16.msra.mxu0 %v673_v8  ;;  %695 = vmatpush3.bf16.msra.mxu1 %v673_v8 }
  0xf9   :  { %v677_v13 = vpack.c.bf16 %v252_v10, %v251_v12  ;;  %v497_v10 = vlaneseq }
  0xfb   :  { %678 = vmatprep.subr.bf16.mxu0 %v677_v13  ;;  %688 = vmatprep.subr.bf16.mxu1 %v677_v13 }
  0xfc   :  { %680 = vmatpush3.bf16.msra.mxu0 %v677_v13  ;;  %696 = vmatpush3.bf16.msra.mxu1 %v677_v13  ;;  %v498_v13 = vshrl.u32 %v497_v10, 7 }
  0xff   :  { %638 = vmatmul.mubr.f32.vlgmr.msra.gmra.mrb[16].mxu0 %v254_v14  ;;  %641 = vmatmul.mubr.f32.vlgmr.msra.gmra.mrb[0].mxu1 %v256_v15 }
 0x100   :  { %643 = vmatprep.mubr.f32.mxu1 %v257_v16  ;;  %v499_v16 = vsub.s32 0, %v498_v13 }
 0x103   :  { %644 = vmatmul.mubr.f32.gmra.mrb[2].mxu1 %v258_v17 }
 0x104   :  { %646 = vmatprep.mubr.f32.mxu1 %v259_v18  ;;  %v495_v18 = vpop.permute.xlu0 %494 }
 0x107   :  { %647 = vmatmul.mubr.f32.gmra.mrb[4].mxu1 %v260_v19 }
 0x1d2   :  { %v639_v30 = vpop.f32.mrb[16].mxu0  ;;  %v642_v31 = vpop.f32.mrb[0].mxu1 }
 0x1d3   :  { %v381_v32 = vadd.f32 %v639_v30, %v277_v22  ;;  %v391_v33 = vadd.f32 %v642_v31, %v287_v23  ;;  %v375_v34 = vpop.f32.mrb[17].mxu0  ;;  %v385_v35 = vpop.f32.mrb[1].mxu1 }
 0x1d4   :  { %v376_v36 = vadd.f32 %v375_v34, %v272_v20  ;;  %v386_v37 = vadd.f32 %v385_v35, %v282_v21  ;;  %v500_v20 = vrot.slane %v495_v18, %v499_v16 }
 0x1d5   :  { %v415_v39 = vmax.f32 %v381_v32, 0.0  ;;  %v417_v45 = vmax.f32 %v391_v33, 0.0 }
 0x1d6   :  { %v414_v40 = vmax.f32 %v376_v36, 0.0  ;;  %v416_v41 = vmax.f32 %v386_v37, 0.0  ;;  %v645_v42 = vpop.f32.mrb[2].mxu1 }
 0x1d7   :  { %v471_v44 = vmul.f32 %v438_v25, %v415_v39  ;;  %v395_v46 = vpop.f32.mrb[3].mxu1  ;;  %v401_v48 = vadd.f32 %v645_v42, %v297_v28  ;;  %v473_v55 = vmul.f32 %v448_v29, %v417_v45 }
 0x1d8   :  { %v470_v47 = vmul.f32 %v433_v24, %v414_v40  ;;  %v396_v49 = vadd.f32 %v395_v46, %v292_v26  ;;  %v472_v51 = vmul.f32 %v443_v27, %v416_v41 }
 0x1d9   :  { %v419_v58 = vmax.f32 %v401_v48, 0.0 }
 0x1da   :  { %v478_v50 = vadd.f32 %v471_v44, %v470_v47  ;;  %v418_v52 = vmax.f32 %v396_v49, 0.0  ;;  %v648_v53 = vpop.f32.mrb[4].mxu1 }
 0x1db   :  { %v405_v56 = vpop.f32.mrb[5].mxu1  ;;  %v411_v59 = vadd.f32 %v648_v53, %v307_v54  ;;  %v475_v1 = vmul.f32 %v458_v61, %v419_v58 }
 0x1dc   :  { %v479_v57 = vadd.f32 %v478_v50, %v472_v51  ;;  %v406_v60 = vadd.f32 %v405_v56, %v302_v38  ;;  %v474_v62 = vmul.f32 %v453_v43, %v418_v52 }
 0x1dd   :  { %v421_v3 = vmax.f32 %v411_v59, 0.0 }
 0x1de   :  { %v480_v63 = vadd.f32 %v479_v57, %v473_v55  ;;  %v420_v0 = vmax.f32 %v406_v60, 0.0 }
 0x1df   :  { %v477_v8 = vmul.f32 %v468_v7, %v421_v3 }
 0x1e0   :  { %v481_v2 = vadd.f32 %v480_v63, %v474_v62  ;;  %v476_v5 = vmul.f32 %v463_v4, %v420_v0 }
 0x1e2   :  { %v482_v6 = vadd.f32 %v481_v2, %v475_v1 }
 0x1e4   :  { %v483_v9 = vadd.f32 %v482_v6, %v476_v5 }
 0x1e6   :  { %v484_v11 = vadd.f32 %v483_v9, %v477_v8 }
 0x1e8   :  { %v485_v12 = vrot.slane %v484_v11, 4 }
 0x1ea   :  { %v486_v14 = vadd.f32 %v485_v12, %v484_v11 }
 0x1ec   :  { %v487_v15 = vrot.slane %v486_v14, 2 }
 0x1ee   :  { %v488_v17 = vadd.f32 %v487_v15, %v486_v14 }
 0x1f0   :  { %v489_v19 = vrot.slane %v488_v17, 1 }
 0x1f2   :  { %v490_v21 = vadd.f32 %v489_v19, %v488_v17 }
 0x1f4   :  { %v501_v22 = vadd.f32 %v500_v20, %v490_v21 }
 0x1f6   :  { %v502_v23 = vsub.f32 0.0, %v501_v22 }
 0x1f8   :  { %v503_v24 = vmul.f32 1.442695, %v502_v23 }
 0x1fa   :  { %701 = vpow2.f32 %v503_v24 }
 0x204   :  { %v702_v25 = vpop.eup %701 }
 0x205   :  { %v505_v26 = vadd.f32 1.0, %v702_v25 }
 0x207   :  { %703 = vrcp.f32 %v505_v26 }
 0x211   :  { %v704_v27 = vpop.eup %703 }
 0x212   :  { %507 = vst [vmem:[#allocation3] sm:$0x1] %v704_v27 }
 0x213   :  { %716 = shalt.err (!%p713_p4)
}
 0x214   :  { %s717_s28 = scalar_lea.hbm %s926_s6, 16 }
 0x215   :  { %p718_p5 = scmp.ne.s32.totalorder %s926_s6, %s717_s28  ;;  %p721_p6 = scmp.lt.u32.totalorder %s717_s28, %s926_s6 }
 0x217   :  { %p723_p7 = pnand %p721_p6, %p718_p5 }
 0x219   :  { %726 = shalt.err (!%p723_p7)
}
 0x21a   :  { %517 = dma.vmem_to_hbm [thread:$0]  %s515_s23, 16, %s926_s6, [#allocation4]  }
 0x21b   :  { %727 = dma.done.wait [#allocation4], 16  }
 0x21c   :  { %728 = vsyncadd [#allocation4], 4294967280 }
 0x21d   :  { %521 = vsyncpa [#allocation4], 1 }

</bundles_post_ra>
